<compile_context>
chip_gen: v6e
topology: v6e:2x2x1
jax: 0.10.0
libtpu: 0.0.40
codegen_flags: <defaults>
</compile_context>

<pallas_src>
import functools
import math
from typing import NamedTuple

import jax
import jax.numpy as jnp
from jax.experimental import pallas as pl
from jax.experimental.pallas import tpu as pltpu

_LANE = 128


def _round_up(x, m):
    return ((x + m - 1) // m) * m


def _vmem_capacity_bytes():
    """Physical per-core VMEM; conservative 64 MiB fallback (v7x) if the query fails."""
    try:
        info = pltpu.get_tpu_info()
        cap = getattr(info, "vmem_capacity_bytes", None)
        if cap:
            return int(cap)
    except Exception:
        pass
    return 64 * 1024 * 1024


def _fused_mlp_kernel(*refs, num_layers, compute_dtype):
    """refs = (x_ref, w0, b0, w1, b1, ..., o_ref). Whole MLP for one batch tile.

    Intermediate activations never leave on-chip memory.
    """
    x_ref = refs[0]
    o_ref = refs[-1]

    h = x_ref[...].astype(jnp.float32)
    for layer in range(num_layers):
        w_ref = refs[1 + 2 * layer]
        b_ref = refs[2 + 2 * layer]
        if layer > 0:
            # ReLU on the *input* of every hidden layer (see module-level TODO).
            h = jnp.maximum(h, 0.0)
        # bf16 (or f32) operands into the MXU, f32 accumulation; bias add stays f32 on the VPU.
        h = jnp.dot(h.astype(compute_dtype), w_ref[...],
                    preferred_element_type=jnp.float32)
        h = h + b_ref[...].astype(jnp.float32)
    o_ref[...] = h.astype(o_ref.dtype)


class PackedMLP(NamedTuple):
    flat: tuple            # (w0p, b0p, w1p, b1p, ...) lane-padded params
    dims: tuple            # logical feature dims, len = num_layers + 1
    pdims: tuple           # lane-padded feature dims
    weight_dtype: object   # dtype fed to the MXU (bf16 by default)


def pack_params(params, *, use_bf16=True):
    """One-time padding + dtype cast of the MLP parameters.

    Call this once at init (NOT inside the per-step forward).  Padded rows/cols are
    zero, which is numerically exact through ReLU + matmul.
    params: list of (W (Din_l, Dout_l), b (1, Dout_l)) in f32, W stored as (in, out).
    """
    weight_dtype = jnp.bfloat16 if use_bf16 else jnp.float32
    dims = [params[0][0].shape[0]] + [w.shape[1] for (w, _) in params]
    pdims = [_round_up(d, _LANE) for d in dims]
    flat = []
    for l, (w, b) in enumerate(params):
        if w.shape[0] != dims[l]:
            raise ValueError("layer fan_in does not match previous layer fan_out")
        pi, po = pdims[l], pdims[l + 1]
        wp = jnp.zeros((pi, po), dtype=weight_dtype)
        wp = wp.at[:w.shape[0], :w.shape[1]].set(w.astype(weight_dtype))
        bp = jnp.zeros((1, po), dtype=jnp.float32)
        bp = bp.at[:, :b.shape[1]].set(b.astype(jnp.float32))
        flat += [wp, bp]
    return PackedMLP(tuple(flat), tuple(dims), tuple(pdims), weight_dtype)


def mlp_forward(x, packed: PackedMLP, *, tile_b=512, vmem_limit_bytes=None):
    """Fused MLP forward. x: (B, Din); packed: output of pack_params()."""
    B, Din = x.shape
    dims, pdims = packed.dims, packed.pdims
    num_layers = len(packed.flat) // 2
    if Din != dims[0]:
        raise ValueError("input feature dim does not match packed params")

    # ---- generation-aware VMEM budget -------------------------------------------------
    cap = _vmem_capacity_bytes()
    if vmem_limit_bytes is None:
        vmem_limit_bytes = int(cap * 0.85)          # ~54 MiB on v7x, ~108 MiB on v5e/v6e
    vmem_limit_bytes = int(min(vmem_limit_bytes, cap - (4 << 20)))

    # ---- batch tile: sublane-aligned, as large as the budget allows -------------------
    itemsize = jnp.dtype(x.dtype).itemsize
    sublane = {4: 8, 2: 16, 1: 32}.get(itemsize, 8)
    tile_b = max(sublane, (int(tile_b) // sublane) * sublane)     # clamp to sublane multiple
    tb = min(_round_up(B, sublane), tile_b)

    wbytes = jnp.dtype(packed.weight_dtype).itemsize
    weight_bytes = sum(pdims[l] * pdims[l + 1] * wbytes + pdims[l + 1] * 4
                       for l in range(num_layers))               # single-buffered residency

    def _fits(t):
        io_bytes = 2 * t * (pdims[0] + pdims[-1]) * itemsize      # double-buffered x / y tiles
        work_bytes = 3 * t * max(pdims) * 4                       # f32 working activations
        return weight_bytes + io_bytes + work_bytes <= vmem_limit_bytes

    if not _fits(sublane):
        # TODO(synk): layer too wide for VMEM-resident weights; stream K-chunks instead.
        raise ValueError(
            f"padded weights (~{weight_bytes / 2**20:.1f} MiB) do not fit the "
            f"{vmem_limit_bytes / 2**20:.1f} MiB VMEM budget")
    while tb > sublane and not _fits(tb):
        tb = max(sublane, ((tb // 2) // sublane) * sublane)

    Bp = _round_up(B, tb)
    assert Bp % tb == 0 and tb % sublane == 0

    # Pad the activation only (weights were padded once in pack_params).
    if Bp == B and pdims[0] == Din:
        xp = x
    else:
        xp = jnp.zeros((Bp, pdims[0]), dtype=x.dtype).at[:B, :Din].set(x)

    kernel = functools.partial(_fused_mlp_kernel, num_layers=num_layers,
                               compute_dtype=packed.weight_dtype)

    def _call(single_buffer_weights: bool):
        in_specs = [pl.BlockSpec((tb, pdims[0]), lambda i: (i, 0))]
        for l in range(num_layers):
            pi, po = pdims[l], pdims[l + 1]
            if single_buffer_weights:
                # Constant index_map -> DMA'd once; single pipeline buffer halves the
                # weight VMEM footprint (matters most under v7x's 64 MiB VMEM).
                in_specs.append(pl.BlockSpec((pi, po), lambda i: (0, 0),
                                             pipeline_mode=pl.Buffered(1)))
                in_specs.append(pl.BlockSpec((1, po), lambda i: (0, 0),
                                             pipeline_mode=pl.Buffered(1)))
            else:
                in_specs.append(pl.BlockSpec((pi, po), lambda i: (0, 0)))
                in_specs.append(pl.BlockSpec((1, po), lambda i: (0, 0)))

        return pl.pallas_call(
            kernel,
            out_shape=jax.ShapeDtypeStruct((Bp, pdims[-1]), x.dtype),
            grid=(Bp // tb,),
            in_specs=in_specs,
            out_specs=pl.BlockSpec((tb, pdims[-1]), lambda i: (i, 0)),
            compiler_params=pltpu.CompilerParams(
                dimension_semantics=("parallel",),   # shards batch tiles across TCs on v7x
                vmem_limit_bytes=vmem_limit_bytes,
            ),
        )(xp, *packed.flat)

    try:
        out = _call(True)
    except Exception:
        # Fallback for jax versions without BlockSpec pipeline_mode support.
        out = _call(False)

    return out[:B, :dims[-1]]


def init_mlp_params(key, in_shape, out_shape, depth, hidden_shapes):
    """Deterministic PyTorch-Linear-style init (uniform +/- 1/sqrt(fan_in))."""
    if len(hidden_shapes) != depth:
        raise Exception('')
    dims = [in_shape] + list(hidden_shapes) + [out_shape]
    params = []
    for i in range(len(dims) - 1):
        fan_in, fan_out = dims[i], dims[i + 1]
        key, kw, kb = jax.random.split(key, 3)
        bound = 1.0 / math.sqrt(fan_in)
        # Stored as (in, out) so the kernel computes x @ W + b (== x @ W_torch.T + b).
        w = jax.random.uniform(kw, (fan_in, fan_out), jnp.float32, -bound, bound)
        b = jax.random.uniform(kb, (1, fan_out), jnp.float32, -bound, bound)
        params.append((w, b))
    return params


def mlp_forward_reference(x, params):
    out = x
    for idx, (w, b) in enumerate(params):
        if idx > 0:
            out = jnp.maximum(out, 0.0)
        out = out @ w + b
    return out


if __name__ == "__main__":
    key = jax.random.PRNGKey(0)
    kx, kp = jax.random.split(key)

    batch = 24
    in_shape, out_shape = 16, 8
    depth = 2
    hidden_shapes = [32, 32]

    x = jax.random.normal(kx, (batch, in_shape), dtype=jnp.float32)
    params = init_mlp_params(kp, in_shape, out_shape, depth, hidden_shapes)
    y_ref = mlp_forward_reference(x, params)

    # Default (fast) path: bf16 MXU operands, f32 accumulation.  At these tiny sizes the
    # whole padded batch fits one grid step, which is the cheapest configuration.
    packed_bf16 = pack_params(params, use_bf16=True)   # one-time prep, not per call
    y = jax.block_until_ready(mlp_forward(x, packed_bf16))
    assert y.shape == (batch, out_shape)
    assert y.dtype == x.dtype
    assert jnp.allclose(y, y_ref, atol=3e-2, rtol=3e-2)

    # Full-precision path: checks the fused kernel structure tightly against the reference.
    packed_f32 = pack_params(params, use_bf16=False)
    y32 = jax.block_until_ready(mlp_forward(x, packed_f32))
    assert jnp.allclose(y32, y_ref, atol=1e-5, rtol=1e-5)

    print("KERNEL_OK")
</pallas_src>

<mosaic_0001>
module attributes {stable_mosaic.version = 11 : i64} {
  func.func @_fused_mlp_kernel(%arg0: i32, %arg1: memref<24x128xf32, #tpu.memory_space<vmem>>, %arg2: memref<128x128xbf16, #tpu.memory_space<vmem>>, %arg3: memref<1x128xf32, #tpu.memory_space<vmem>>, %arg4: memref<128x128xbf16, #tpu.memory_space<vmem>>, %arg5: memref<1x128xf32, #tpu.memory_space<vmem>>, %arg6: memref<128x128xbf16, #tpu.memory_space<vmem>>, %arg7: memref<1x128xf32, #tpu.memory_space<vmem>>, %arg8: memref<24x128xf32, #tpu.memory_space<vmem>>) attributes {dimension_semantics = [#tpu.dimension_semantics<parallel>], iteration_bounds = array<i64: 1>, scalar_prefetch = 0 : i64, scratch_operands = 0 : i64, tpu.core_type = #tpu.core_type<tc>, window_params = [{transform_indices = @transform_0, window_bounds = array<i64: 24, 128>}, {pipeline_mode = #tpu.pipeline_mode<synchronous>, transform_indices = @transform_1, window_bounds = array<i64: 128, 128>}, {pipeline_mode = #tpu.pipeline_mode<synchronous>, transform_indices = @transform_2, window_bounds = array<i64: 1, 128>}, {pipeline_mode = #tpu.pipeline_mode<synchronous>, transform_indices = @transform_3, window_bounds = array<i64: 128, 128>}, {pipeline_mode = #tpu.pipeline_mode<synchronous>, transform_indices = @transform_4, window_bounds = array<i64: 1, 128>}, {pipeline_mode = #tpu.pipeline_mode<synchronous>, transform_indices = @transform_5, window_bounds = array<i64: 128, 128>}, {pipeline_mode = #tpu.pipeline_mode<synchronous>, transform_indices = @transform_6, window_bounds = array<i64: 1, 128>}, {transform_indices = @transform_7, window_bounds = array<i64: 24, 128>}]} {
    %c0 = arith.constant 0 : index
    %c0_0 = arith.constant 0 : index
    %0 = vector.load %arg1[%c0, %c0_0] : memref<24x128xf32, #tpu.memory_space<vmem>>, vector<24x128xf32>
    %1 = arith.truncf %0 : vector<24x128xf32> to vector<24x128xbf16>
    %c0_1 = arith.constant 0 : index
    %c0_2 = arith.constant 0 : index
    %2 = vector.load %arg2[%c0_1, %c0_2] : memref<128x128xbf16, #tpu.memory_space<vmem>>, vector<128x128xbf16>
    %cst = arith.constant dense<0.000000e+00> : vector<24x128xf32>
    %3 = tpu.matmul %1, %2, %cst {dimension_numbers = #tpu.dot_dimension_numbers<[1], [0], [0], [1], [0, 0, 1, 1], [], []>} : vector<24x128xbf16>, vector<128x128xbf16>, vector<24x128xf32> -> vector<24x128xf32>
    %c0_3 = arith.constant 0 : index
    %c0_4 = arith.constant 0 : index
    %4 = vector.load %arg3[%c0_3, %c0_4] : memref<1x128xf32, #tpu.memory_space<vmem>>, vector<1x128xf32>
    %5 = vector.broadcast %4 : vector<1x128xf32> to vector<24x128xf32>
    %6 = arith.addf %3, %5 : vector<24x128xf32>
    %cst_5 = arith.constant 0.000000e+00 : f32
    %7 = vector.broadcast %cst_5 : f32 to vector<24x128xf32>
    %8 = arith.maximumf %6, %7 : vector<24x128xf32>
    %9 = arith.truncf %8 : vector<24x128xf32> to vector<24x128xbf16>
    %c0_6 = arith.constant 0 : index
    %c0_7 = arith.constant 0 : index
    %10 = vector.load %arg4[%c0_6, %c0_7] : memref<128x128xbf16, #tpu.memory_space<vmem>>, vector<128x128xbf16>
    %cst_8 = arith.constant dense<0.000000e+00> : vector<24x128xf32>
    %11 = tpu.matmul %9, %10, %cst_8 {dimension_numbers = #tpu.dot_dimension_numbers<[1], [0], [0], [1], [0, 0, 1, 1], [], []>} : vector<24x128xbf16>, vector<128x128xbf16>, vector<24x128xf32> -> vector<24x128xf32>
    %c0_9 = arith.constant 0 : index
    %c0_10 = arith.constant 0 : index
    %12 = vector.load %arg5[%c0_9, %c0_10] : memref<1x128xf32, #tpu.memory_space<vmem>>, vector<1x128xf32>
    %13 = vector.broadcast %12 : vector<1x128xf32> to vector<24x128xf32>
    %14 = arith.addf %11, %13 : vector<24x128xf32>
    %cst_11 = arith.constant 0.000000e+00 : f32
    %15 = vector.broadcast %cst_11 : f32 to vector<24x128xf32>
    %16 = arith.maximumf %14, %15 : vector<24x128xf32>
    %17 = arith.truncf %16 : vector<24x128xf32> to vector<24x128xbf16>
    %c0_12 = arith.constant 0 : index
    %c0_13 = arith.constant 0 : index
    %18 = vector.load %arg6[%c0_12, %c0_13] : memref<128x128xbf16, #tpu.memory_space<vmem>>, vector<128x128xbf16>
    %cst_14 = arith.constant dense<0.000000e+00> : vector<24x128xf32>
    %19 = tpu.matmul %17, %18, %cst_14 {dimension_numbers = #tpu.dot_dimension_numbers<[1], [0], [0], [1], [0, 0, 1, 1], [], []>} : vector<24x128xbf16>, vector<128x128xbf16>, vector<24x128xf32> -> vector<24x128xf32>
    %c0_15 = arith.constant 0 : index
    %c0_16 = arith.constant 0 : index
    %20 = vector.load %arg7[%c0_15, %c0_16] : memref<1x128xf32, #tpu.memory_space<vmem>>, vector<1x128xf32>
    %21 = vector.broadcast %20 : vector<1x128xf32> to vector<24x128xf32>
    %22 = arith.addf %19, %21 : vector<24x128xf32>
    %c0_17 = arith.constant 0 : index
    %c0_18 = arith.constant 0 : index
    %23 = vector.load %arg8[%c0_17, %c0_18] : memref<24x128xf32, #tpu.memory_space<vmem>>, vector<24x128xf32>
    tpu.vector_store %arg8[%c0_17, %c0_18], %22 {strides = array<i32>} : memref<24x128xf32, #tpu.memory_space<vmem>>, vector<24x128xf32>,
    return
  }
  func.func @transform_0(%arg0: i32) -> (i32, i32) {
    %c0_i32 = arith.constant 0 : i32
    %c0_i32_0 = arith.constant 0 : i32
    return %arg0, %c0_i32 : i32, i32
  }
  func.func @transform_1(%arg0: i32) -> (i32, i32) {
    %c0_i32 = arith.constant 0 : i32
    %c0_i32_0 = arith.constant 0 : i32
    %c0_i32_1 = arith.constant 0 : i32
    return %c0_i32, %c0_i32_0 : i32, i32
  }
  func.func @transform_2(%arg0: i32) -> (i32, i32) {
    %c0_i32 = arith.constant 0 : i32
    %c0_i32_0 = arith.constant 0 : i32
    %c0_i32_1 = arith.constant 0 : i32
    return %c0_i32, %c0_i32_0 : i32, i32
  }
  func.func @transform_3(%arg0: i32) -> (i32, i32) {
    %c0_i32 = arith.constant 0 : i32
    %c0_i32_0 = arith.constant 0 : i32
    %c0_i32_1 = arith.constant 0 : i32
    return %c0_i32, %c0_i32_0 : i32, i32
  }
  func.func @transform_4(%arg0: i32) -> (i32, i32) {
    %c0_i32 = arith.constant 0 : i32
    %c0_i32_0 = arith.constant 0 : i32
    %c0_i32_1 = arith.constant 0 : i32
    return %c0_i32, %c0_i32_0 : i32, i32
  }
  func.func @transform_5(%arg0: i32) -> (i32, i32) {
    %c0_i32 = arith.constant 0 : i32
    %c0_i32_0 = arith.constant 0 : i32
    %c0_i32_1 = arith.constant 0 : i32
    return %c0_i32, %c0_i32_0 : i32, i32
  }
  func.func @transform_6(%arg0: i32) -> (i32, i32) {
    %c0_i32 = arith.constant 0 : i32
    %c0_i32_0 = arith.constant 0 : i32
    %c0_i32_1 = arith.constant 0 : i32
    return %c0_i32, %c0_i32_0 : i32, i32
  }
  func.func @transform_7(%arg0: i32) -> (i32, i32) {
    %c0_i32 = arith.constant 0 : i32
    %c0_i32_0 = arith.constant 0 : i32
    return %arg0, %c0_i32 : i32, i32
  }
}

module attributes {stable_mosaic.version = 11 : i64} {
  func.func @_fused_mlp_kernel(%arg0: i32, %arg1: memref<24x128xf32, #tpu.memory_space<vmem>>, %arg2: memref<128x128xbf16, #tpu.memory_space<vmem>>, %arg3: memref<1x128xf32, #tpu.memory_space<vmem>>, %arg4: memref<128x128xbf16, #tpu.memory_space<vmem>>, %arg5: memref<1x128xf32, #tpu.memory_space<vmem>>, %arg6: memref<128x128xbf16, #tpu.memory_space<vmem>>, %arg7: memref<1x128xf32, #tpu.memory_space<vmem>>, %arg8: memref<24x128xf32, #tpu.memory_space<vmem>>) attributes {dimension_semantics = [#tpu.dimension_semantics<parallel>], iteration_bounds = array<i64: 1>, scalar_prefetch = 0 : i64, scratch_operands = 0 : i64, tpu.core_type = #tpu.core_type<tc>, window_params = [{transform_indices = @transform_0, window_bounds = array<i64: 24, 128>}, {pipeline_mode = #tpu.pipeline_mode<synchronous>, transform_indices = @transform_1, window_bounds = array<i64: 128, 128>}, {pipeline_mode = #tpu.pipeline_mode<synchronous>, transform_indices = @transform_2, window_bounds = array<i64: 1, 128>}, {pipeline_mode = #tpu.pipeline_mode<synchronous>, transform_indices = @transform_3, window_bounds = array<i64: 128, 128>}, {pipeline_mode = #tpu.pipeline_mode<synchronous>, transform_indices = @transform_4, window_bounds = array<i64: 1, 128>}, {pipeline_mode = #tpu.pipeline_mode<synchronous>, transform_indices = @transform_5, window_bounds = array<i64: 128, 128>}, {pipeline_mode = #tpu.pipeline_mode<synchronous>, transform_indices = @transform_6, window_bounds = array<i64: 1, 128>}, {transform_indices = @transform_7, window_bounds = array<i64: 24, 128>}]} {
    %c0 = arith.constant 0 : index
    %c0_0 = arith.constant 0 : index
    %0 = vector.load %arg1[%c0, %c0_0] : memref<24x128xf32, #tpu.memory_space<vmem>>, vector<24x128xf32>
    %1 = arith.truncf %0 : vector<24x128xf32> to vector<24x128xbf16>
    %c0_1 = arith.constant 0 : index
    %c0_2 = arith.constant 0 : index
    %2 = vector.load %arg2[%c0_1, %c0_2] : memref<128x128xbf16, #tpu.memory_space<vmem>>, vector<128x128xbf16>
    %cst = arith.constant dense<0.000000e+00> : vector<24x128xf32>
    %3 = tpu.matmul %1, %2, %cst {dimension_numbers = #tpu.dot_dimension_numbers<[1], [0], [0], [1], [0, 0, 1, 1], [], []>} : vector<24x128xbf16>, vector<128x128xbf16>, vector<24x128xf32> -> vector<24x128xf32>
    %c0_3 = arith.constant 0 : index
    %c0_4 = arith.constant 0 : index
    %4 = vector.load %arg3[%c0_3, %c0_4] : memref<1x128xf32, #tpu.memory_space<vmem>>, vector<1x128xf32>
    %5 = vector.broadcast %4 : vector<1x128xf32> to vector<24x128xf32>
    %6 = arith.addf %3, %5 : vector<24x128xf32>
    %cst_5 = arith.constant 0.000000e+00 : f32
    %7 = vector.broadcast %cst_5 : f32 to vector<24x128xf32>
    %8 = arith.maximumf %6, %7 : vector<24x128xf32>
    %9 = arith.truncf %8 : vector<24x128xf32> to vector<24x128xbf16>
    %c0_6 = arith.constant 0 : index
    %c0_7 = arith.constant 0 : index
    %10 = vector.load %arg4[%c0_6, %c0_7] : memref<128x128xbf16, #tpu.memory_space<vmem>>, vector<128x128xbf16>
    %cst_8 = arith.constant dense<0.000000e+00> : vector<24x128xf32>
    %11 = tpu.matmul %9, %10, %cst_8 {dimension_numbers = #tpu.dot_dimension_numbers<[1], [0], [0], [1], [0, 0, 1, 1], [], []>} : vector<24x128xbf16>, vector<128x128xbf16>, vector<24x128xf32> -> vector<24x128xf32>
    %c0_9 = arith.constant 0 : index
    %c0_10 = arith.constant 0 : index
    %12 = vector.load %arg5[%c0_9, %c0_10] : memref<1x128xf32, #tpu.memory_space<vmem>>, vector<1x128xf32>
    %13 = vector.broadcast %12 : vector<1x128xf32> to vector<24x128xf32>
    %14 = arith.addf %11, %13 : vector<24x128xf32>
    %cst_11 = arith.constant 0.000000e+00 : f32
    %15 = vector.broadcast %cst_11 : f32 to vector<24x128xf32>
    %16 = arith.maximumf %14, %15 : vector<24x128xf32>
    %17 = arith.truncf %16 : vector<24x128xf32> to vector<24x128xbf16>
    %c0_12 = arith.constant 0 : index
    %c0_13 = arith.constant 0 : index
    %18 = vector.load %arg6[%c0_12, %c0_13] : memref<128x128xbf16, #tpu.memory_space<vmem>>, vector<128x128xbf16>
    %cst_14 = arith.constant dense<0.000000e+00> : vector<24x128xf32>
    %19 = tpu.matmul %17, %18, %cst_14 {dimension_numbers = #tpu.dot_dimension_numbers<[1], [0], [0], [1], [0, 0, 1, 1], [], []>} : vector<24x128xbf16>, vector<128x128xbf16>, vector<24x128xf32> -> vector<24x128xf32>
    %c0_15 = arith.constant 0 : index
    %c0_16 = arith.constant 0 : index
    %20 = vector.load %arg7[%c0_15, %c0_16] : memref<1x128xf32, #tpu.memory_space<vmem>>, vector<1x128xf32>
    %21 = vector.broadcast %20 : vector<1x128xf32> to vector<24x128xf32>
    %22 = arith.addf %19, %21 : vector<24x128xf32>
    %c0_17 = arith.constant 0 : index
    %c0_18 = arith.constant 0 : index
    %23 = vector.load %arg8[%c0_17, %c0_18] : memref<24x128xf32, #tpu.memory_space<vmem>>, vector<24x128xf32>
    tpu.vector_store %arg8[%c0_17, %c0_18], %22 {strides = array<i32>} : memref<24x128xf32, #tpu.memory_space<vmem>>, vector<24x128xf32>,
    return
  }
  func.func @transform_0(%arg0: i32) -> (i32, i32) {
    %c0_i32 = arith.constant 0 : i32
    %c0_i32_0 = arith.constant 0 : i32
    return %arg0, %c0_i32 : i32, i32
  }
  func.func @transform_1(%arg0: i32) -> (i32, i32) {
    %c0_i32 = arith.constant 0 : i32
    %c0_i32_0 = arith.constant 0 : i32
    %c0_i32_1 = arith.constant 0 : i32
    return %c0_i32, %c0_i32_0 : i32, i32
  }
  func.func @transform_2(%arg0: i32) -> (i32, i32) {
    %c0_i32 = arith.constant 0 : i32
    %c0_i32_0 = arith.constant 0 : i32
    %c0_i32_1 = arith.constant 0 : i32
    return %c0_i32, %c0_i32_0 : i32, i32
  }
  func.func @transform_3(%arg0: i32) -> (i32, i32) {
    %c0_i32 = arith.constant 0 : i32
    %c0_i32_0 = arith.constant 0 : i32
    %c0_i32_1 = arith.constant 0 : i32
    return %c0_i32, %c0_i32_0 : i32, i32
  }
  func.func @transform_4(%arg0: i32) -> (i32, i32) {
    %c0_i32 = arith.constant 0 : i32
    %c0_i32_0 = arith.constant 0 : i32
    %c0_i32_1 = arith.constant 0 : i32
    return %c0_i32, %c0_i32_0 : i32, i32
  }
  func.func @transform_5(%arg0: i32) -> (i32, i32) {
    %c0_i32 = arith.constant 0 : i32
    %c0_i32_0 = arith.constant 0 : i32
    %c0_i32_1 = arith.constant 0 : i32
    return %c0_i32, %c0_i32_0 : i32, i32
  }
  func.func @transform_6(%arg0: i32) -> (i32, i32) {
    %c0_i32 = arith.constant 0 : i32
    %c0_i32_0 = arith.constant 0 : i32
    %c0_i32_1 = arith.constant 0 : i32
    return %c0_i32, %c0_i32_0 : i32, i32
  }
  func.func @transform_7(%arg0: i32) -> (i32, i32) {
    %c0_i32 = arith.constant 0 : i32
    %c0_i32_0 = arith.constant 0 : i32
    return %arg0, %c0_i32 : i32, i32
  }
}

</mosaic_0001>

<bundles_post_ra>
// kernel: tpu_custom_call.1
= control target key start
LH: loop header
LB: loop body
LE: loop exit
PB: predicated region body
PF: predicated region fallthrough
CT: control target
= control target key end

     0   :  { %12 = vsyncpa [#allocation3], 0  ;;  %s823_s0 = inlined_call_operand.hbm [shape: f32[24,128], index: 0, kind: input, shape index: {}]   ;;  %s824_s1 = inlined_call_operand.hbm [shape: bf16[128,128], index: 1, kind: input, shape index: {}]   ;;  %s825_s2 = inlined_call_operand.vmem [shape: f32[1,128], index: 2, kind: input, shape index: {}]   ;;  %s826_s3 = inlined_call_operand.hbm [shape: bf16[128,128], index: 3, kind: input, shape index: {}]   ;;  %s827_s4 = inlined_call_operand.vmem [shape: f32[1,128], index: 4, kind: input, shape index: {}]   ;;  %s828_s5 = inlined_call_operand.hbm [shape: bf16[128,128], index: 5, kind: input, shape index: {}]   ;;  %s829_s6 = inlined_call_operand.vmem [shape: f32[1,128], index: 6, kind: input, shape index: {}]   ;;  %s830_s7 = inlined_call_operand.hbm [shape: f32[24,128], index: 7, kind: output, shape index: {}]  }
   0x1   :  { %13 = vsyncpa [#allocation6], 0 }
   0x2   :  { %14 = vsyncpa [#allocation9], 0 }
   0x3   :  { %15 = vsyncpa [#allocation4], 0  ;;  %s735_s24 = smov [#allocation5]  }
   0x4   :  { %s33_s25 = sshll.u32 %s735_s24, 4  ;;  %s34_s25 = int_to_ptr.vmem [resolvable:$true] %s33_s25 }
   0x5   :  { %s635_s26 = scalar_lea.vmem %s34_s25, 1024  ;;  %p640_p1 = scmp.lt.s32.totalorder %s34_s25, %s34_s25 }
   0x6   :  { %p636_p0 = scmp.ne.s32.totalorder %s34_s25, %s635_s26  ;;  %p641_p2 = scmp.lt.s32.totalorder %s635_s26, %s635_s26 }
   0x8   :  { %p642_p3 = por %p641_p2, %p640_p1 }
   0xa   :  { %p643_p4 = pnand %p642_p3, %p636_p0 }
   0xc   :  { %646 = shalt.err (!%p643_p4)
}
   0xd   :  { %s736_s27 = smov 64   ;;  %s737_s28 = smov 4  }
   0xe   :  { %39 = dma.hbm_to_vmem [thread:$0]  %s824_s1, 1024, %s34_s25, [#allocation6], %s736_s27, %s736_s27, %s737_s28  }
   0xf   :  { %s738_s8 = smov [#allocation2]  }
  0x10   :  { %s21_s9 = sshll.u32 %s738_s8, 4  ;;  %s22_s9 = int_to_ptr.vmem [resolvable:$true] %s21_s9 }
  0x11   :  { %s655_s10 = scalar_lea.vmem %s22_s9, 384  ;;  %p660_p6 = scmp.lt.s32.totalorder %s22_s9, %s22_s9 }
  0x12   :  { %p656_p5 = scmp.ne.s32.totalorder %s22_s9, %s655_s10  ;;  %p661_p7 = scmp.lt.s32.totalorder %s655_s10, %s655_s10 }
  0x14   :  { %p662_p8 = por %p661_p7, %p660_p6 }
  0x16   :  { %p663_p9 = pnand %p662_p8, %p656_p5 }
  0x18   :  { %666 = shalt.err (!%p663_p9)
}
  0x19   :  { %s739_s11 = smov 128   ;;  %s740_s12 = smov 8  }
  0x1a   :  { %27 = dma.hbm_to_vmem [thread:$0]  %s823_s0, 384, %s22_s9, [#allocation3], %s739_s11, %s739_s11, %s740_s12  }
  0x1b   :  { %s741_s1 = smov [#allocation7]   ;;  %s742_s16 = smov [#allocation8]  }
  0x1c   :  { %s47_s15 = sshll.u32 %s741_s1, 4  ;;  %s61_s17 = sshll.u32 %s742_s16, 4  ;;  %s48_s15 = int_to_ptr.vmem [resolvable:$true] %s47_s15  ;;  %s62_s17 = int_to_ptr.vmem [resolvable:$true] %s61_s17 }
  0x1d   :  { %s675_s18 = scalar_lea.vmem %s48_s15, 1024  ;;  %p680_p11 = scmp.lt.s32.totalorder %s48_s15, %s48_s15 }
  0x1e   :  { %p676_p10 = scmp.ne.s32.totalorder %s48_s15, %s675_s18  ;;  %p681_p12 = scmp.lt.s32.totalorder %s675_s18, %s675_s18 }
  0x20   :  { %p682_p13 = por %p681_p12, %p680_p11 }
  0x22   :  { %p683_p0 = pnand %p682_p13, %p676_p10 }
  0x24   :  { %686 = shalt.err (!%p683_p0)
}
  0x25   :  { %53 = dma.hbm_to_vmem [thread:$0]  %s826_s3, 1024, %s48_s15, [#allocation6], %s736_s27, %s736_s27, %s737_s28  }
  0x26   :  { %s695_s0 = scalar_lea.vmem %s62_s17, 1024  ;;  %p700_p2 = scmp.lt.s32.totalorder %s62_s17, %s62_s17 }
  0x27   :  { %p696_p1 = scmp.ne.s32.totalorder %s62_s17, %s695_s0  ;;  %p701_p3 = scmp.lt.s32.totalorder %s695_s0, %s695_s0 }
  0x29   :  { %p702_p4 = por %p701_p3, %p700_p2 }
  0x2b   :  { %p703_p5 = pnand %p702_p4, %p696_p1 }
  0x2d   :  { %706 = shalt.err (!%p703_p5)
}
  0x2e   :  { %67 = dma.hbm_to_vmem [thread:$0]  %s828_s5, 1024, %s62_s17, [#allocation9], %s736_s27, %s736_s27, %s737_s28  }
  0x2f   :  { %727 = dma.done.wait [#allocation3], 384  }
  0x30   :  { %728 = vsyncadd [#allocation3], 4294966912 }
  0x31   :  { %729 = dma.done.wait [#allocation6], 2048  }
  0x32   :  { %730 = vsyncadd [#allocation6], 4294965248 }
  0x33   :  { %731 = dma.done.wait [#allocation9], 1024  }
  0x34   :  { %732 = vsyncadd [#allocation9], 4294966272  ;;  %v603_v0 = vld [vmem:[#allocation5 + $0x38] sm:$0xff]   ;;  %v604_v1 = vld [vmem:[#allocation5 + $0x30] sm:$0xff]  }
  0x35   :  { %534 = vmatprep.subr.bf16.mxu0 %v603_v0  ;;  %v605_v2 = vld [vmem:[#allocation5 + $0x28] sm:$0xff]   ;;  %v606_v3 = vld [vmem:[#allocation5 + $0x20] sm:$0xff]   ;;  %v84_v5 = vld [vmem:[#allocation2 + $0x8] sm:$0xff] }
  0x36   :  { %535 = vmatpush3.bf16.msra.mxu0 %v603_v0  ;;  %v83_v4 = vld [vmem:[#allocation2] sm:$0xff]  ;;  %v611_v7 = vld [vmem:[#allocation7 + $0x38] sm:$0xff]   ;;  %v612_v8 = vld [vmem:[#allocation7 + $0x30] sm:$0xff]  }
  0x37   :  { %536 = vmatprep.subr.bf16.mxu0 %v604_v1  ;;  %v86_v6 = vpack.c.bf16 %v84_v5, %v83_v4  ;;  %v607_v9 = vld [vmem:[#allocation5 + $0x18] sm:$0xff]   ;;  %554 = vmatprep.subr.bf16.mxu1 %v611_v7  ;;  %v613_v10 = vld [vmem:[#allocation7 + $0x28] sm:$0xff]   ;;  %v608_v11 = vld [vmem:[#allocation5 + $0x10] sm:$0xff]  }
  0x38   :  { %555 = vmatpush3.bf16.msra.mxu1 %v611_v7  ;;  %v614_v12 = vld [vmem:[#allocation7 + $0x20] sm:$0xff]   ;;  %v609_v13 = vld [vmem:[#allocation5 + $0x8] sm:$0xff]   ;;  %v615_v14 = vld [vmem:[#allocation7 + $0x18] sm:$0xff]  }
  0x39   :  { %550 = vmatprep.mubr.bf16.mxu0 %v86_v6  ;;  %556 = vmatprep.subr.bf16.mxu1 %v612_v8  ;;  %v610_v15 = vld [vmem:[#allocation5] sm:$0xff]   ;;  %v85_v16 = vld [vmem:[#allocation2 + $0x10] sm:$0xff]  ;;  %v616_v18 = vld [vmem:[#allocation7 + $0x10] sm:$0xff]  }
  0x3a   :  { %537 = vmatpush3.bf16.msra.mxu0 %v604_v1  ;;  %v87_v17 = vpack.c.bf16 %v85_v16, %v85_v16  ;;  %v617_v19 = vld [vmem:[#allocation7 + $0x8] sm:$0xff]   ;;  %v618_v20 = vld [vmem:[#allocation7] sm:$0xff]   ;;  %v619_v21 = vld [vmem:[#allocation8 + $0x38] sm:$0xff]  }
  0x3b   :  { %538 = vmatprep.subr.bf16.mxu0 %v605_v2  ;;  %v620_v22 = vld [vmem:[#allocation8 + $0x30] sm:$0xff]   ;;  %v621_v23 = vld [vmem:[#allocation8 + $0x28] sm:$0xff]   ;;  %v622_v24 = vld [vmem:[#allocation8 + $0x20] sm:$0xff]  }
  0x3c   :  { %557 = vmatpush3.bf16.msra.mxu1 %v612_v8  ;;  %v623_v25 = vld [vmem:[#allocation8 + $0x18] sm:$0xff]   ;;  %v477_v27 = vld [vmem:[%s825_s2] ss:$0 sm:$0xff]  ;;  %v624_v39 = vld [vmem:[#allocation8 + $0x10] sm:$0xff]  }
  0x3d   :  { %558 = vmatprep.subr.bf16.mxu1 %v613_v10  ;;  %v625_v40 = vld [vmem:[#allocation8 + $0x8] sm:$0xff]   ;;  %v626_v41 = vld [vmem:[#allocation8] sm:$0xff]  }
  0x3e   :  { %539 = vmatpush3.bf16.msra.mxu0 %v605_v2  ;;  %v486_v43 = vld [vmem:[%s827_s4] ss:$0 sm:$0xff]  ;;  %s743_s4 = smov [#allocation10]  }
  0x3f   :  { %540 = vmatprep.subr.bf16.mxu0 %v606_v3  ;;  %v495_v55 = vld [vmem:[%s829_s6] ss:$0 sm:$0xff]  ;;  %s463_s26 = sshll.u32 %s743_s4, 4  ;;  %s464_s26 = int_to_ptr.vmem [resolvable:$true] %s463_s26 }
  0x40   :  { %559 = vmatpush3.bf16.msra.mxu1 %v613_v10  ;;  %s707_s27 = scalar_lea.vmem %s464_s26, 384  ;;  %p712_p7 = scmp.lt.s32.totalorder %s464_s26, %s464_s26 }
  0x41   :  { %560 = vmatprep.subr.bf16.mxu1 %v614_v12  ;;  %p708_p6 = scmp.ne.s32.totalorder %s464_s26, %s707_s27  ;;  %p713_p8 = scmp.lt.s32.totalorder %s707_s27, %s707_s27 }
  0x42   :  { %541 = vmatpush3.bf16.msra.mxu0 %v606_v3 }
  0x43   :  { %542 = vmatprep.subr.bf16.mxu0 %v607_v9  ;;  %p714_p9 = por %p713_p8, %p712_p7 }
  0x44   :  { %561 = vmatpush3.bf16.msra.mxu1 %v614_v12 }
  0x45   :  { %562 = vmatprep.subr.bf16.mxu1 %v615_v14  ;;  %p715_p10 = pnand %p714_p9, %p708_p6 }
  0x46   :  { %543 = vmatpush3.bf16.msra.mxu0 %v607_v9 }
  0x47   :  { %544 = vmatprep.subr.bf16.mxu0 %v608_v11 }
  0x48   :  { %563 = vmatpush3.bf16.msra.mxu1 %v615_v14 }
  0x49   :  { %564 = vmatprep.subr.bf16.mxu1 %v616_v18 }
  0x4a   :  { %545 = vmatpush3.bf16.msra.mxu0 %v608_v11 }
  0x4b   :  { %546 = vmatprep.subr.bf16.mxu0 %v609_v13 }
  0x4c   :  { %565 = vmatpush3.bf16.msra.mxu1 %v616_v18 }
  0x4d   :  { %566 = vmatprep.subr.bf16.mxu1 %v617_v19 }
  0x4e   :  { %547 = vmatpush3.bf16.msra.mxu0 %v609_v13 }
  0x4f   :  { %548 = vmatprep.subr.bf16.mxu0 %v610_v15 }
  0x50   :  { %567 = vmatpush3.bf16.msra.mxu1 %v617_v19 }
  0x51   :  { %568 = vmatprep.subr.bf16.mxu1 %v618_v20 }
  0x52   :  { %549 = vmatpush3.bf16.msra.mxu0 %v610_v15 }
  0x53   :  { %574 = vmatprep.subr.bf16.mxu0 %v619_v21 }
  0x54   :  { %569 = vmatpush3.bf16.msra.mxu1 %v618_v20 }
  0x55   :  { %551 = vmatmul.mubr.bf16.vlgmr.msra.gmra.mxu0 %v87_v17 }
  0x56   :  { %575 = vmatpush3.bf16.msra.mxu0 %v619_v21 }
  0x57   :  { %576 = vmatprep.subr.bf16.mxu0 %v620_v22 }
  0x5a   :  { %577 = vmatpush3.bf16.msra.mxu0 %v620_v22 }
  0x5b   :  { %578 = vmatprep.subr.bf16.mxu0 %v621_v23 }
  0x5e   :  { %579 = vmatpush3.bf16.msra.mxu0 %v621_v23 }
  0x5f   :  { %580 = vmatprep.subr.bf16.mxu0 %v622_v24 }
  0x62   :  { %581 = vmatpush3.bf16.msra.mxu0 %v622_v24 }
  0x63   :  { %582 = vmatprep.subr.bf16.mxu0 %v623_v25 }
  0x66   :  { %583 = vmatpush3.bf16.msra.mxu0 %v623_v25 }
  0x67   :  { %584 = vmatprep.subr.bf16.mxu0 %v624_v39 }
  0x6a   :  { %585 = vmatpush3.bf16.msra.mxu0 %v624_v39 }
  0x6b   :  { %586 = vmatprep.subr.bf16.mxu0 %v625_v40 }
  0x6e   :  { %587 = vmatpush3.bf16.msra.mxu0 %v625_v40 }
  0x6f   :  { %588 = vmatprep.subr.bf16.mxu0 %v626_v41 }
  0x72   :  { %589 = vmatpush3.bf16.msra.mxu0 %v626_v41 }
 0x115   :  { %v552_v26 = vpop.f32.mrf.mxu0 }
 0x116   :  { %v202_v29 = vadd.f32 %v552_v26, %v477_v27 }
 0x117   :  { %v193_v28 = vpop.f32.mrf.mxu0 }
 0x118   :  { %v194_v31 = vadd.f32 %v477_v27, %v193_v28  ;;  %v209_v34 = vmax.f32 %v202_v29, 0.0 }
 0x119   :  { %v553_v30 = vpop.f32.mrf.mxu0 }
 0x11a   :  { %v207_v35 = vmax.f32 %v194_v31, 0.0  ;;  %v211_v38 = vpack.c.bf16 %v209_v34, %v209_v34 }
 0x11b   :  { %v196_v32 = vpop.f32.mrf.mxu0 }
 0x11c   :  { %v197_v33 = vadd.f32 %v477_v27, %v196_v32 }
 0x11e   :  { %v208_v36 = vmax.f32 %v197_v33, 0.0 }
 0x120   :  { %v210_v37 = vpack.c.bf16 %v208_v36, %v207_v35 }
 0x122   :  { %570 = vmatprep.mubr.bf16.mxu1 %v210_v37 }
 0x123   :  { %571 = vmatmul.mubr.bf16.vlgmr.msra.gmra.mxu1 %v211_v38 }
 0x1e3   :  { %v572_v42 = vpop.f32.mrf.mxu1 }
 0x1e4   :  { %v326_v45 = vadd.f32 %v572_v42, %v486_v43 }
 0x1e5   :  { %v317_v44 = vpop.f32.mrf.mxu1 }
 0x1e6   :  { %v318_v47 = vadd.f32 %v486_v43, %v317_v44  ;;  %v333_v50 = vmax.f32 %v326_v45, 0.0 }
 0x1e7   :  { %v573_v46 = vpop.f32.mrf.mxu1 }
 0x1e8   :  { %v331_v51 = vmax.f32 %v318_v47, 0.0  ;;  %v335_v54 = vpack.c.bf16 %v333_v50, %v333_v50 }
 0x1e9   :  { %v320_v48 = vpop.f32.mrf.mxu1 }
 0x1ea   :  { %v321_v49 = vadd.f32 %v486_v43, %v320_v48 }
 0x1ec   :  { %v332_v52 = vmax.f32 %v321_v49, 0.0 }
 0x1ee   :  { %v334_v53 = vpack.c.bf16 %v332_v52, %v331_v51 }
 0x1f0   :  { %590 = vmatprep.mubr.bf16.mxu0 %v334_v53 }
 0x1f1   :  { %591 = vmatmul.mubr.bf16.vlgmr.msra.gmra.mxu0 %v335_v54 }
 0x2b1   :  { %v592_v56 = vpop.f32.mrf.mxu0 }
 0x2b2   :  { %v450_v57 = vadd.f32 %v592_v56, %v495_v55 }
 0x2b3   :  { %v441_v58 = vpop.f32.mrf.mxu0 }
 0x2b4   :  { %457 = vst [vmem:[#allocation10 + $0x10] sm:$0xff] %v450_v57  ;;  %v442_v59 = vadd.f32 %v495_v55, %v441_v58 }
 0x2b5   :  { %v593_v60 = vpop.f32.mrf.mxu0 }
 0x2b6   :  { %455 = vst [vmem:[#allocation10] sm:$0xff] %v442_v59 }
 0x2b7   :  { %v444_v61 = vpop.f32.mrf.mxu0 }
 0x2b8   :  { %v445_v62 = vadd.f32 %v495_v55, %v444_v61 }
 0x2ba   :  { %456 = vst [vmem:[#allocation10 + $0x8] sm:$0xff] %v445_v62 }
 0x2bb   :  { %718 = shalt.err (!%p715_p10)
}
 0x2bc   :  { %469 = dma.vmem_to_hbm [thread:$0]  %s464_s26, 384, %s830_s7, [#allocation4], %s739_s11, %s739_s11, %s740_s12  }
 0x2bd   :  { %733 = dma.done.wait [#allocation4], 384  }
 0x2be   :  { %734 = vsyncadd [#allocation4], 4294966912 }
 0x2bf   :  { %473 = vsyncpa [#allocation3], 1 }
 0x2c0   :  { %474 = vsyncpa [#allocation6], 1 }
 0x2c1   :  { %475 = vsyncpa [#allocation9], 1 }
 0x2c2   :  { %476 = vsyncpa [#allocation4], 1 }

// kernel: tpu_custom_call.1
= control target key start
LH: loop header
LB: loop body
LE: loop exit
PB: predicated region body
PF: predicated region fallthrough
CT: control target
= control target key end

     0   :  { %12 = vsyncpa [#allocation3], 0  ;;  %s823_s0 = inlined_call_operand.hbm [shape: f32[24,128], index: 0, kind: input, shape index: {}]   ;;  %s824_s1 = inlined_call_operand.hbm [shape: bf16[128,128], index: 1, kind: input, shape index: {}]   ;;  %s825_s2 = inlined_call_operand.vmem [shape: f32[1,128], index: 2, kind: input, shape index: {}]   ;;  %s826_s3 = inlined_call_operand.hbm [shape: bf16[128,128], index: 3, kind: input, shape index: {}]   ;;  %s827_s4 = inlined_call_operand.vmem [shape: f32[1,128], index: 4, kind: input, shape index: {}]   ;;  %s828_s5 = inlined_call_operand.hbm [shape: bf16[128,128], index: 5, kind: input, shape index: {}]   ;;  %s829_s6 = inlined_call_operand.vmem [shape: f32[1,128], index: 6, kind: input, shape index: {}]   ;;  %s830_s7 = inlined_call_operand.hbm [shape: f32[24,128], index: 7, kind: output, shape index: {}]  }
   0x1   :  { %13 = vsyncpa [#allocation6], 0 }
   0x2   :  { %14 = vsyncpa [#allocation9], 0 }
   0x3   :  { %15 = vsyncpa [#allocation4], 0  ;;  %s735_s24 = smov [#allocation5]  }
   0x4   :  { %s33_s25 = sshll.u32 %s735_s24, 4  ;;  %s34_s25 = int_to_ptr.vmem [resolvable:$true] %s33_s25 }
   0x5   :  { %s635_s26 = scalar_lea.vmem %s34_s25, 1024  ;;  %p640_p1 = scmp.lt.s32.totalorder %s34_s25, %s34_s25 }
   0x6   :  { %p636_p0 = scmp.ne.s32.totalorder %s34_s25, %s635_s26  ;;  %p641_p2 = scmp.lt.s32.totalorder %s635_s26, %s635_s26 }
   0x8   :  { %p642_p3 = por %p641_p2, %p640_p1 }
   0xa   :  { %p643_p4 = pnand %p642_p3, %p636_p0 }
   0xc   :  { %646 = shalt.err (!%p643_p4)
}
   0xd   :  { %s736_s27 = smov 64   ;;  %s737_s28 = smov 4  }
   0xe   :  { %39 = dma.hbm_to_vmem [thread:$0]  %s824_s1, 1024, %s34_s25, [#allocation6], %s736_s27, %s736_s27, %s737_s28  }
   0xf   :  { %s738_s8 = smov [#allocation2]  }
  0x10   :  { %s21_s9 = sshll.u32 %s738_s8, 4  ;;  %s22_s9 = int_to_ptr.vmem [resolvable:$true] %s21_s9 }
  0x11   :  { %s655_s10 = scalar_lea.vmem %s22_s9, 384  ;;  %p660_p6 = scmp.lt.s32.totalorder %s22_s9, %s22_s9 }
  0x12   :  { %p656_p5 = scmp.ne.s32.totalorder %s22_s9, %s655_s10  ;;  %p661_p7 = scmp.lt.s32.totalorder %s655_s10, %s655_s10 }
  0x14   :  { %p662_p8 = por %p661_p7, %p660_p6 }
  0x16   :  { %p663_p9 = pnand %p662_p8, %p656_p5 }
  0x18   :  { %666 = shalt.err (!%p663_p9)
}
  0x19   :  { %s739_s11 = smov 128   ;;  %s740_s12 = smov 8  }
  0x1a   :  { %27 = dma.hbm_to_vmem [thread:$0]  %s823_s0, 384, %s22_s9, [#allocation3], %s739_s11, %s739_s11, %s740_s12  }
  0x1b   :  { %s741_s1 = smov [#allocation7]   ;;  %s742_s16 = smov [#allocation8]  }
  0x1c   :  { %s47_s15 = sshll.u32 %s741_s1, 4  ;;  %s61_s17 = sshll.u32 %s742_s16, 4  ;;  %s48_s15 = int_to_ptr.vmem [resolvable:$true] %s47_s15  ;;  %s62_s17 = int_to_ptr.vmem [resolvable:$true] %s61_s17 }
  0x1d   :  { %s675_s18 = scalar_lea.vmem %s48_s15, 1024  ;;  %p680_p11 = scmp.lt.s32.totalorder %s48_s15, %s48_s15 }
  0x1e   :  { %p676_p10 = scmp.ne.s32.totalorder %s48_s15, %s675_s18  ;;  %p681_p12 = scmp.lt.s32.totalorder %s675_s18, %s675_s18 }
  0x20   :  { %p682_p13 = por %p681_p12, %p680_p11 }
  0x22   :  { %p683_p0 = pnand %p682_p13, %p676_p10 }
  0x24   :  { %686 = shalt.err (!%p683_p0)
}
  0x25   :  { %53 = dma.hbm_to_vmem [thread:$0]  %s826_s3, 1024, %s48_s15, [#allocation6], %s736_s27, %s736_s27, %s737_s28  }
  0x26   :  { %s695_s0 = scalar_lea.vmem %s62_s17, 1024  ;;  %p700_p2 = scmp.lt.s32.totalorder %s62_s17, %s62_s17 }
  0x27   :  { %p696_p1 = scmp.ne.s32.totalorder %s62_s17, %s695_s0  ;;  %p701_p3 = scmp.lt.s32.totalorder %s695_s0, %s695_s0 }
  0x29   :  { %p702_p4 = por %p701_p3, %p700_p2 }
  0x2b   :  { %p703_p5 = pnand %p702_p4, %p696_p1 }
  0x2d   :  { %706 = shalt.err (!%p703_p5)
}
  0x2e   :  { %67 = dma.hbm_to_vmem [thread:$0]  %s828_s5, 1024, %s62_s17, [#allocation9], %s736_s27, %s736_s27, %s737_s28  }
  0x2f   :  { %727 = dma.done.wait [#allocation3], 384  }
  0x30   :  { %728 = vsyncadd [#allocation3], 4294966912 }
  0x31   :  { %729 = dma.done.wait [#allocation6], 2048  }
  0x32   :  { %730 = vsyncadd [#allocation6], 4294965248 }
  0x33   :  { %731 = dma.done.wait [#allocation9], 1024  }
  0x34   :  { %732 = vsyncadd [#allocation9], 4294966272  ;;  %v603_v0 = vld [vmem:[#allocation5 + $0x38] sm:$0xff]   ;;  %v604_v1 = vld [vmem:[#allocation5 + $0x30] sm:$0xff]  }
  0x35   :  { %534 = vmatprep.subr.bf16.mxu0 %v603_v0  ;;  %v605_v2 = vld [vmem:[#allocation5 + $0x28] sm:$0xff]   ;;  %v606_v3 = vld [vmem:[#allocation5 + $0x20] sm:$0xff]   ;;  %v84_v5 = vld [vmem:[#allocation2 + $0x8] sm:$0xff] }
  0x36   :  { %535 = vmatpush3.bf16.msra.mxu0 %v603_v0  ;;  %v83_v4 = vld [vmem:[#allocation2] sm:$0xff]  ;;  %v611_v7 = vld [vmem:[#allocation7 + $0x38] sm:$0xff]   ;;  %v612_v8 = vld [vmem:[#allocation7 + $0x30] sm:$0xff]  }
  0x37   :  { %536 = vmatprep.subr.bf16.mxu0 %v604_v1  ;;  %v86_v6 = vpack.c.bf16 %v84_v5, %v83_v4  ;;  %v607_v9 = vld [vmem:[#allocation5 + $0x18] sm:$0xff]   ;;  %554 = vmatprep.subr.bf16.mxu1 %v611_v7  ;;  %v613_v10 = vld [vmem:[#allocation7 + $0x28] sm:$0xff]   ;;  %v608_v11 = vld [vmem:[#allocation5 + $0x10] sm:$0xff]  }
  0x38   :  { %555 = vmatpush3.bf16.msra.mxu1 %v611_v7  ;;  %v614_v12 = vld [vmem:[#allocation7 + $0x20] sm:$0xff]   ;;  %v609_v13 = vld [vmem:[#allocation5 + $0x8] sm:$0xff]   ;;  %v615_v14 = vld [vmem:[#allocation7 + $0x18] sm:$0xff]  }
  0x39   :  { %550 = vmatprep.mubr.bf16.mxu0 %v86_v6  ;;  %556 = vmatprep.subr.bf16.mxu1 %v612_v8  ;;  %v610_v15 = vld [vmem:[#allocation5] sm:$0xff]   ;;  %v85_v16 = vld [vmem:[#allocation2 + $0x10] sm:$0xff]  ;;  %v616_v18 = vld [vmem:[#allocation7 + $0x10] sm:$0xff]  }
  0x3a   :  { %537 = vmatpush3.bf16.msra.mxu0 %v604_v1  ;;  %v87_v17 = vpack.c.bf16 %v85_v16, %v85_v16  ;;  %v617_v19 = vld [vmem:[#allocation7 + $0x8] sm:$0xff]   ;;  %v618_v20 = vld [vmem:[#allocation7] sm:$0xff]   ;;  %v619_v21 = vld [vmem:[#allocation8 + $0x38] sm:$0xff]  }
  0x3b   :  { %538 = vmatprep.subr.bf16.mxu0 %v605_v2  ;;  %v620_v22 = vld [vmem:[#allocation8 + $0x30] sm:$0xff]   ;;  %v621_v23 = vld [vmem:[#allocation8 + $0x28] sm:$0xff]   ;;  %v622_v24 = vld [vmem:[#allocation8 + $0x20] sm:$0xff]  }
  0x3c   :  { %557 = vmatpush3.bf16.msra.mxu1 %v612_v8  ;;  %v623_v25 = vld [vmem:[#allocation8 + $0x18] sm:$0xff]   ;;  %v477_v27 = vld [vmem:[%s825_s2] ss:$0 sm:$0xff]  ;;  %v624_v39 = vld [vmem:[#allocation8 + $0x10] sm:$0xff]  }
  0x3d   :  { %558 = vmatprep.subr.bf16.mxu1 %v613_v10  ;;  %v625_v40 = vld [vmem:[#allocation8 + $0x8] sm:$0xff]   ;;  %v626_v41 = vld [vmem:[#allocation8] sm:$0xff]  }
  0x3e   :  { %539 = vmatpush3.bf16.msra.mxu0 %v605_v2  ;;  %v486_v43 = vld [vmem:[%s827_s4] ss:$0 sm:$0xff]  ;;  %s743_s4 = smov [#allocation10]  }
  0x3f   :  { %540 = vmatprep.subr.bf16.mxu0 %v606_v3  ;;  %v495_v55 = vld [vmem:[%s829_s6] ss:$0 sm:$0xff]  ;;  %s463_s26 = sshll.u32 %s743_s4, 4  ;;  %s464_s26 = int_to_ptr.vmem [resolvable:$true] %s463_s26 }
  0x40   :  { %559 = vmatpush3.bf16.msra.mxu1 %v613_v10  ;;  %s707_s27 = scalar_lea.vmem %s464_s26, 384  ;;  %p712_p7 = scmp.lt.s32.totalorder %s464_s26, %s464_s26 }
  0x41   :  { %560 = vmatprep.subr.bf16.mxu1 %v614_v12  ;;  %p708_p6 = scmp.ne.s32.totalorder %s464_s26, %s707_s27  ;;  %p713_p8 = scmp.lt.s32.totalorder %s707_s27, %s707_s27 }
  0x42   :  { %541 = vmatpush3.bf16.msra.mxu0 %v606_v3 }
  0x43   :  { %542 = vmatprep.subr.bf16.mxu0 %v607_v9  ;;  %p714_p9 = por %p713_p8, %p712_p7 }
  0x44   :  { %561 = vmatpush3.bf16.msra.mxu1 %v614_v12 }
  0x45   :  { %562 = vmatprep.subr.bf16.mxu1 %v615_v14  ;;  %p715_p10 = pnand %p714_p9, %p708_p6 }
  0x46   :  { %543 = vmatpush3.bf16.msra.mxu0 %v607_v9 }
  0x47   :  { %544 = vmatprep.subr.bf16.mxu0 %v608_v11 }
  0x48   :  { %563 = vmatpush3.bf16.msra.mxu1 %v615_v14 }
  0x49   :  { %564 = vmatprep.subr.bf16.mxu1 %v616_v18 }
  0x4a   :  { %545 = vmatpush3.bf16.msra.mxu0 %v608_v11 }
  0x4b   :  { %546 = vmatprep.subr.bf16.mxu0 %v609_v13 }
  0x4c   :  { %565 = vmatpush3.bf16.msra.mxu1 %v616_v18 }
  0x4d   :  { %566 = vmatprep.subr.bf16.mxu1 %v617_v19 }
  0x4e   :  { %547 = vmatpush3.bf16.msra.mxu0 %v609_v13 }
  0x4f   :  { %548 = vmatprep.subr.bf16.mxu0 %v610_v15 }
  0x50   :  { %567 = vmatpush3.bf16.msra.mxu1 %v617_v19 }
  0x51   :  { %568 = vmatprep.subr.bf16.mxu1 %v618_v20 }
  0x52   :  { %549 = vmatpush3.bf16.msra.mxu0 %v610_v15 }
  0x53   :  { %574 = vmatprep.subr.bf16.mxu0 %v619_v21 }
  0x54   :  { %569 = vmatpush3.bf16.msra.mxu1 %v618_v20 }
  0x55   :  { %551 = vmatmul.mubr.bf16.vlgmr.msra.gmra.mxu0 %v87_v17 }
  0x56   :  { %575 = vmatpush3.bf16.msra.mxu0 %v619_v21 }
  0x57   :  { %576 = vmatprep.subr.bf16.mxu0 %v620_v22 }
  0x5a   :  { %577 = vmatpush3.bf16.msra.mxu0 %v620_v22 }
  0x5b   :  { %578 = vmatprep.subr.bf16.mxu0 %v621_v23 }
  0x5e   :  { %579 = vmatpush3.bf16.msra.mxu0 %v621_v23 }
  0x5f   :  { %580 = vmatprep.subr.bf16.mxu0 %v622_v24 }
  0x62   :  { %581 = vmatpush3.bf16.msra.mxu0 %v622_v24 }
  0x63   :  { %582 = vmatprep.subr.bf16.mxu0 %v623_v25 }
  0x66   :  { %583 = vmatpush3.bf16.msra.mxu0 %v623_v25 }
  0x67   :  { %584 = vmatprep.subr.bf16.mxu0 %v624_v39 }
  0x6a   :  { %585 = vmatpush3.bf16.msra.mxu0 %v624_v39 }
  0x6b   :  { %586 = vmatprep.subr.bf16.mxu0 %v625_v40 }
  0x6e   :  { %587 = vmatpush3.bf16.msra.mxu0 %v625_v40 }
  0x6f   :  { %588 = vmatprep.subr.bf16.mxu0 %v626_v41 }
  0x72   :  { %589 = vmatpush3.bf16.msra.mxu0 %v626_v41 }
 0x115   :  { %v552_v26 = vpop.f32.mrf.mxu0 }
 0x116   :  { %v202_v29 = vadd.f32 %v552_v26, %v477_v27 }
 0x117   :  { %v193_v28 = vpop.f32.mrf.mxu0 }
 0x118   :  { %v194_v31 = vadd.f32 %v477_v27, %v193_v28  ;;  %v209_v34 = vmax.f32 %v202_v29, 0.0 }
 0x119   :  { %v553_v30 = vpop.f32.mrf.mxu0 }
 0x11a   :  { %v207_v35 = vmax.f32 %v194_v31, 0.0  ;;  %v211_v38 = vpack.c.bf16 %v209_v34, %v209_v34 }
 0x11b   :  { %v196_v32 = vpop.f32.mrf.mxu0 }
 0x11c   :  { %v197_v33 = vadd.f32 %v477_v27, %v196_v32 }
 0x11e   :  { %v208_v36 = vmax.f32 %v197_v33, 0.0 }
 0x120   :  { %v210_v37 = vpack.c.bf16 %v208_v36, %v207_v35 }
 0x122   :  { %570 = vmatprep.mubr.bf16.mxu1 %v210_v37 }
 0x123   :  { %571 = vmatmul.mubr.bf16.vlgmr.msra.gmra.mxu1 %v211_v38 }
 0x1e3   :  { %v572_v42 = vpop.f32.mrf.mxu1 }
 0x1e4   :  { %v326_v45 = vadd.f32 %v572_v42, %v486_v43 }
 0x1e5   :  { %v317_v44 = vpop.f32.mrf.mxu1 }
 0x1e6   :  { %v318_v47 = vadd.f32 %v486_v43, %v317_v44  ;;  %v333_v50 = vmax.f32 %v326_v45, 0.0 }
 0x1e7   :  { %v573_v46 = vpop.f32.mrf.mxu1 }
 0x1e8   :  { %v331_v51 = vmax.f32 %v318_v47, 0.0  ;;  %v335_v54 = vpack.c.bf16 %v333_v50, %v333_v50 }
 0x1e9   :  { %v320_v48 = vpop.f32.mrf.mxu1 }
 0x1ea   :  { %v321_v49 = vadd.f32 %v486_v43, %v320_v48 }
 0x1ec   :  { %v332_v52 = vmax.f32 %v321_v49, 0.0 }
 0x1ee   :  { %v334_v53 = vpack.c.bf16 %v332_v52, %v331_v51 }
 0x1f0   :  { %590 = vmatprep.mubr.bf16.mxu0 %v334_v53 }
 0x1f1   :  { %591 = vmatmul.mubr.bf16.vlgmr.msra.gmra.mxu0 %v335_v54 }
 0x2b1   :  { %v592_v56 = vpop.f32.mrf.mxu0 }
 0x2b2   :  { %v450_v57 = vadd.f32 %v592_v56, %v495_v55 }
 0x2b3   :  { %v441_v58 = vpop.f32.mrf.mxu0 }
 0x2b4   :  { %457 = vst [vmem:[#allocation10 + $0x10] sm:$0xff] %v450_v57  ;;  %v442_v59 = vadd.f32 %v495_v55, %v441_v58 }
 0x2b5   :  { %v593_v60 = vpop.f32.mrf.mxu0 }
 0x2b6   :  { %455 = vst [vmem:[#allocation10] sm:$0xff] %v442_v59 }
 0x2b7   :  { %v444_v61 = vpop.f32.mrf.mxu0 }
 0x2b8   :  { %v445_v62 = vadd.f32 %v495_v55, %v444_v61 }
 0x2ba   :  { %456 = vst [vmem:[#allocation10 + $0x8] sm:$0xff] %v445_v62 }
 0x2bb   :  { %718 = shalt.err (!%p715_p10)
}
 0x2bc   :  { %469 = dma.vmem_to_hbm [thread:$0]  %s464_s26, 384, %s830_s7, [#allocation4], %s739_s11, %s739_s11, %s740_s12  }
 0x2bd   :  { %733 = dma.done.wait [#allocation4], 384  }
 0x2be   :  { %734 = vsyncadd [#allocation4], 4294966912 }
 0x2bf   :  { %473 = vsyncpa [#allocation3], 1 }
 0x2c0   :  { %474 = vsyncpa [#allocation6], 1 }
 0x2c1   :  { %475 = vsyncpa [#allocation9], 1 }
 0x2c2   :  { %476 = vsyncpa [#allocation4], 1 }

</bundles_post_ra>
